<compile_context>
chip_gen: v7x
topology: tpu7x:2x2x1
jax: 0.10.0
libtpu: 0.0.40
codegen_flags: <defaults>
</compile_context>

<pallas_src>
import jax
import jax.numpy as jnp
from jax.experimental import pallas as pl
from jax.experimental.pallas import tpu as pltpu


# --------------------------------------------------------------------------
# Fused kernel: per-batch 3-layer MLP(s) + channel-split projection.
# --------------------------------------------------------------------------
def _make_fused_kernel(has_future):
    def _mlp_cols(x_lc, w1t, b1c, w2t, b2c, w3t, b3c):
        # x_lc: [L, C] block in the ORIGINAL layout (seq in sublanes, channels
        # in lanes). Weights are pre-transposed to [out, in] and biases are
        # column vectors, so each layer is a plain jnp.dot and the PyTorch
        # permute(0, 2, 1) is folded into the contraction for free.
        h = jnp.dot(w1t, x_lc, preferred_element_type=jnp.float32) + b1c
        h = jnp.maximum(h, 0.0)
        h = jnp.dot(w2t, h, preferred_element_type=jnp.float32) + b2c
        h = jnp.maximum(h, 0.0)
        return jnp.dot(w3t, h, preferred_element_type=jnp.float32) + b3c  # [D, C]

    if has_future:
        def kernel(x_ref, w1t, b1c, w2t, b2c, w3t, b3c,
                   f_ref, v1t, c1c, v2t, c2c, v3t, c3c,
                   wpo_ref, wpf_ref, bp_ref, o_ref):
            z = _mlp_cols(x_ref[0], w1t[...], b1c[...], w2t[...], b2c[...],
                          w3t[...], b3c[...])                               # [D, C]
            zf = _mlp_cols(f_ref[0], v1t[...], c1c[...], v2t[...], c2c[...],
                           v3t[...], c3c[...])                              # [D, Cf]
            # Channel concat + ex_proj fused: zcat @ wp == z @ wp[:C] + zf @ wp[C:]
            y = (jnp.dot(z, wpo_ref[...], preferred_element_type=jnp.float32)
                 + jnp.dot(zf, wpf_ref[...], preferred_element_type=jnp.float32)
                 + bp_ref[...])                                             # [D, Tc]
            o_ref[0] = y.astype(o_ref.dtype)
    else:
        def kernel(x_ref, w1t, b1c, w2t, b2c, w3t, b3c,
                   wpo_ref, bp_ref, o_ref):
            z = _mlp_cols(x_ref[0], w1t[...], b1c[...], w2t[...], b2c[...],
                          w3t[...], b3c[...])                               # [D, C]
            y = jnp.dot(z, wpo_ref[...],
                        preferred_element_type=jnp.float32) + bp_ref[...]
            o_ref[0] = y.astype(o_ref.dtype)

    return kernel


# --------------------------------------------------------------------------
# Full CIMLPConditioner forward (single pallas_call)
# --------------------------------------------------------------------------
def ci_mlp_conditioner(params, observed_data, future_features=None, **kwargs):
    B, L, C = observed_data.shape
    dtype = observed_data.dtype
    itemsize = jnp.dtype(dtype).itemsize

    def _prep_mlp(p):
        w1, b1, w2, b2, w3, b3 = p
        # Pre-transpose once (tiny, parameter-side work; in a real model the
        # params would simply be stored this way).
        return (w1.T, b1.reshape(-1, 1), w2.T, b2.reshape(-1, 1),
                w3.T, b3.reshape(-1, 1))

    enc = _prep_mlp(params["input_enc"])
    H = enc[0].shape[0]          # hidden_size
    D = enc[4].shape[0]          # latent_dim

    has_future = future_features is not None
    all_channels = C

    inputs = [observed_data, *enc]
    in_specs = [pl.BlockSpec((1, L, C), lambda b: (b, 0, 0))]
    in_specs += [pl.BlockSpec(w.shape, lambda b: (0, 0)) for w in enc]
    flops = 2 * C * (H * L + H * H + D * H)

    if has_future:
        Bf, Lf, Cf = future_features.shape
        ex = _prep_mlp(params["ex_enc"])
        all_channels = C + Cf
        inputs += [future_features, *ex]
        in_specs += [pl.BlockSpec((1, Lf, Cf), lambda b: (b, 0, 0))]
        in_specs += [pl.BlockSpec(w.shape, lambda b: (0, 0)) for w in ex]
        flops += 2 * Cf * (H * Lf + H * H + D * H)

    if params.get("ex_proj") is not None:
        wp, bp = params["ex_proj"]
    else:
        # nn.Identity branch: exact identity projection so the kernel keeps a
        # single lane-dense output path (no in-kernel concat/transpose).
        wp = jnp.eye(all_channels, dtype=dtype)
        bp = jnp.zeros((1, all_channels), dtype=dtype)
    Tc = wp.shape[1]

    # Split the projection weight by channel group (removes the HBM concat).
    inputs += [wp[:C]]
    in_specs += [pl.BlockSpec((C, Tc), lambda b: (0, 0))]
    if has_future:
        inputs += [wp[C:]]
        in_specs += [pl.BlockSpec((all_channels - C, Tc), lambda b: (0, 0))]
    inputs += [bp]
    in_specs += [pl.BlockSpec((1, Tc), lambda b: (0, 0))]
    flops += 2 * D * all_channels * Tc

    bytes_accessed = (sum(int(a.size) for a in inputs) + B * D * Tc) * itemsize
    cost = pl.CostEstimate(flops=int(B * flops), transcendentals=0,
                           bytes_accessed=int(bytes_accessed))

    out = pl.pallas_call(
        _make_fused_kernel(has_future),
        out_shape=jax.ShapeDtypeStruct((B, D, Tc), dtype),
        grid_spec=pltpu.PrefetchScalarGridSpec(
            num_scalar_prefetch=0,
            grid=(B,),
            in_specs=in_specs,
            out_specs=pl.BlockSpec((1, D, Tc), lambda b: (b, 0, 0)),
        ),
        compiler_params=pltpu.CompilerParams(
            dimension_semantics=("parallel",)),
        cost_estimate=cost,
    )(*inputs)
    return out


# --------------------------------------------------------------------------
# Pure-jnp reference + parameter init (PyTorch-style uniform fan-in init)
# --------------------------------------------------------------------------
def _ref_forward(params, observed_data, future_features=None):
    def mlp_ref(x, w1, b1, w2, b2, w3, b3):
        h = jax.nn.relu(x @ w1 + b1)
        h = jax.nn.relu(h @ w2 + b2)
        return h @ w3 + b3

    z = mlp_ref(jnp.transpose(observed_data, (0, 2, 1)), *params["input_enc"])
    if future_features is not None:
        zf = mlp_ref(jnp.transpose(future_features, (0, 2, 1)), *params["ex_enc"])
        z = jnp.concatenate([z, zf], axis=1)
    z = jnp.transpose(z, (0, 2, 1))
    if params.get("ex_proj") is not None:
        wp, bp = params["ex_proj"]
        z = z @ wp + bp
    return z


def _init_linear(key, fan_in, fan_out, dtype=jnp.float32):
    kw, kb = jax.random.split(key)
    bound = 1.0 / (fan_in ** 0.5)
    w = jax.random.uniform(kw, (fan_in, fan_out), dtype, -bound, bound)
    b = jax.random.uniform(kb, (1, fan_out), dtype, -bound, bound)
    return w, b


def _init_mlp(key, in_ch, hidden, latent, dtype=jnp.float32):
    k1, k2, k3 = jax.random.split(key, 3)
    w1, b1 = _init_linear(k1, in_ch, hidden, dtype)
    w2, b2 = _init_linear(k2, hidden, hidden, dtype)
    w3, b3 = _init_linear(k3, hidden, latent, dtype)
    return (w1, b1, w2, b2, w3, b3)


if __name__ == "__main__":
    # Module config (small, consistent with the PyTorch constructor).
    seq_channels = 4
    seq_length = 8
    hidden_size = 32
    latent_dim = 16
    target_seq_channels = 4
    future_seq_channels = 2
    future_seq_length = 8
    batch = 2

    key = jax.random.PRNGKey(0)
    k_in, k_ex, k_proj, k_obs, k_fut = jax.random.split(key, 5)

    all_channels = seq_channels + future_seq_channels
    params = {
        "input_enc": _init_mlp(k_in, seq_length, hidden_size, latent_dim),
        "ex_enc": _init_mlp(k_ex, future_seq_length, hidden_size, latent_dim),
        "ex_proj": (_init_linear(k_proj, all_channels, target_seq_channels)
                    if all_channels != target_seq_channels else None),
    }

    observed_data = jax.random.normal(
        k_obs, (batch, seq_length, seq_channels), jnp.float32)
    future_features = jax.random.normal(
        k_fut, (batch, future_seq_length, future_seq_channels), jnp.float32)

    # Case 1: future features + Linear ex_proj (all_channels != target).
    out = jax.block_until_ready(
        ci_mlp_conditioner(params, observed_data, future_features))
    ref = _ref_forward(params, observed_data, future_features)
    assert out.shape == (batch, latent_dim, target_seq_channels), out.shape
    assert out.dtype == observed_data.dtype
    assert bool(jnp.allclose(out, ref, atol=1e-5, rtol=1e-5)), \
        float(jnp.max(jnp.abs(out - ref)))

    # Case 2: no future features, Identity ex_proj (seq_channels == target).
    params_id = {"input_enc": params["input_enc"], "ex_proj": None}
    out_id = jax.block_until_ready(ci_mlp_conditioner(params_id, observed_data))
    ref_id = _ref_forward(params_id, observed_data)
    assert out_id.shape == (batch, latent_dim, seq_channels), out_id.shape
    assert bool(jnp.allclose(out_id, ref_id, atol=1e-5, rtol=1e-5))

    # Case 3: future features + Identity ex_proj (all_channels == target).
    params_fid = {"input_enc": params["input_enc"],
                  "ex_enc": params["ex_enc"],
                  "ex_proj": None}
    out_fid = jax.block_until_ready(
        ci_mlp_conditioner(params_fid, observed_data, future_features))
    ref_fid = _ref_forward(params_fid, observed_data, future_features)
    assert out_fid.shape == (batch, latent_dim, all_channels), out_fid.shape
    assert bool(jnp.allclose(out_fid, ref_fid, atol=1e-5, rtol=1e-5))

    print("KERNEL_OK")
</pallas_src>

<mosaic_0001>
module attributes {stable_mosaic.version = 11 : i64} {
  func.func @kernel(%arg0: i32, %arg1: memref<1x8x4xf32, #tpu.memory_space<vmem>>, %arg2: memref<32x8xf32, #tpu.memory_space<vmem>>, %arg3: memref<32x1xf32, #tpu.memory_space<vmem>>, %arg4: memref<32x32xf32, #tpu.memory_space<vmem>>, %arg5: memref<32x1xf32, #tpu.memory_space<vmem>>, %arg6: memref<16x32xf32, #tpu.memory_space<vmem>>, %arg7: memref<16x1xf32, #tpu.memory_space<vmem>>, %arg8: memref<1x8x2xf32, #tpu.memory_space<vmem>>, %arg9: memref<32x8xf32, #tpu.memory_space<vmem>>, %arg10: memref<32x1xf32, #tpu.memory_space<vmem>>, %arg11: memref<32x32xf32, #tpu.memory_space<vmem>>, %arg12: memref<32x1xf32, #tpu.memory_space<vmem>>, %arg13: memref<16x32xf32, #tpu.memory_space<vmem>>, %arg14: memref<16x1xf32, #tpu.memory_space<vmem>>, %arg15: memref<4x4xf32, #tpu.memory_space<vmem>>, %arg16: memref<2x4xf32, #tpu.memory_space<vmem>>, %arg17: memref<1x4xf32, #tpu.memory_space<vmem>>, %arg18: memref<1x16x4xf32, #tpu.memory_space<vmem>>) attributes {dimension_semantics = [#tpu.dimension_semantics<parallel>], iteration_bounds = array<i64: 2>, scalar_prefetch = 0 : i64, scratch_operands = 0 : i64, tpu.core_type = #tpu.core_type<tc>, window_params = [{transform_indices = @transform_0, window_bounds = array<i64: 1, 8, 4>}, {pipeline_mode = #tpu.pipeline_mode<synchronous>, transform_indices = @transform_1, window_bounds = array<i64: 32, 8>}, {pipeline_mode = #tpu.pipeline_mode<synchronous>, transform_indices = @transform_2, window_bounds = array<i64: 32, 1>}, {pipeline_mode = #tpu.pipeline_mode<synchronous>, transform_indices = @transform_3, window_bounds = array<i64: 32, 32>}, {pipeline_mode = #tpu.pipeline_mode<synchronous>, transform_indices = @transform_4, window_bounds = array<i64: 32, 1>}, {pipeline_mode = #tpu.pipeline_mode<synchronous>, transform_indices = @transform_5, window_bounds = array<i64: 16, 32>}, {pipeline_mode = #tpu.pipeline_mode<synchronous>, transform_indices = @transform_6, window_bounds = array<i64: 16, 1>}, {transform_indices = @transform_7, window_bounds = array<i64: 1, 8, 2>}, {pipeline_mode = #tpu.pipeline_mode<synchronous>, transform_indices = @transform_8, window_bounds = array<i64: 32, 8>}, {pipeline_mode = #tpu.pipeline_mode<synchronous>, transform_indices = @transform_9, window_bounds = array<i64: 32, 1>}, {pipeline_mode = #tpu.pipeline_mode<synchronous>, transform_indices = @transform_10, window_bounds = array<i64: 32, 32>}, {pipeline_mode = #tpu.pipeline_mode<synchronous>, transform_indices = @transform_11, window_bounds = array<i64: 32, 1>}, {pipeline_mode = #tpu.pipeline_mode<synchronous>, transform_indices = @transform_12, window_bounds = array<i64: 16, 32>}, {pipeline_mode = #tpu.pipeline_mode<synchronous>, transform_indices = @transform_13, window_bounds = array<i64: 16, 1>}, {pipeline_mode = #tpu.pipeline_mode<synchronous>, transform_indices = @transform_14, window_bounds = array<i64: 4, 4>}, {pipeline_mode = #tpu.pipeline_mode<synchronous>, transform_indices = @transform_15, window_bounds = array<i64: 2, 4>}, {pipeline_mode = #tpu.pipeline_mode<synchronous>, transform_indices = @transform_16, window_bounds = array<i64: 1, 4>}, {transform_indices = @transform_17, window_bounds = array<i64: 1, 16, 4>}]} {
    %c0 = arith.constant 0 : index
    %c0_0 = arith.constant 0 : index
    %c0_1 = arith.constant 0 : index
    %0 = vector.load %arg1[%c0, %c0_0, %c0_1] : memref<1x8x4xf32, #tpu.memory_space<vmem>>, vector<1x8x4xf32>
    %1 = vector.shape_cast %0 : vector<1x8x4xf32> to vector<8x4xf32>
    %c0_2 = arith.constant 0 : index
    %c0_3 = arith.constant 0 : index
    %2 = vector.load %arg2[%c0_2, %c0_3] : memref<32x8xf32, #tpu.memory_space<vmem>>, vector<32x8xf32>
    %c0_4 = arith.constant 0 : index
    %c0_5 = arith.constant 0 : index
    %3 = vector.load %arg3[%c0_4, %c0_5] : memref<32x1xf32, #tpu.memory_space<vmem>>, vector<32x1xf32>
    %c0_6 = arith.constant 0 : index
    %c0_7 = arith.constant 0 : index
    %4 = vector.load %arg4[%c0_6, %c0_7] : memref<32x32xf32, #tpu.memory_space<vmem>>, vector<32x32xf32>
    %c0_8 = arith.constant 0 : index
    %c0_9 = arith.constant 0 : index
    %5 = vector.load %arg5[%c0_8, %c0_9] : memref<32x1xf32, #tpu.memory_space<vmem>>, vector<32x1xf32>
    %c0_10 = arith.constant 0 : index
    %c0_11 = arith.constant 0 : index
    %6 = vector.load %arg6[%c0_10, %c0_11] : memref<16x32xf32, #tpu.memory_space<vmem>>, vector<16x32xf32>
    %c0_12 = arith.constant 0 : index
    %c0_13 = arith.constant 0 : index
    %7 = vector.load %arg7[%c0_12, %c0_13] : memref<16x1xf32, #tpu.memory_space<vmem>>, vector<16x1xf32>
    %cst = arith.constant dense<0.000000e+00> : vector<32x4xf32>
    %8 = tpu.matmul %2, %1, %cst {dimension_numbers = #tpu.dot_dimension_numbers<[1], [0], [0], [1], [0, 0, 1, 1], [], []>} : vector<32x8xf32>, vector<8x4xf32>, vector<32x4xf32> -> vector<32x4xf32>
    %9 = vector.broadcast %3 : vector<32x1xf32> to vector<32x4xf32>
    %10 = arith.addf %8, %9 : vector<32x4xf32>
    %cst_14 = arith.constant 0.000000e+00 : f32
    %11 = vector.broadcast %cst_14 : f32 to vector<32x4xf32>
    %12 = arith.maximumf %10, %11 : vector<32x4xf32>
    %cst_15 = arith.constant dense<0.000000e+00> : vector<32x4xf32>
    %13 = tpu.matmul %4, %12, %cst_15 {dimension_numbers = #tpu.dot_dimension_numbers<[1], [0], [0], [1], [0, 0, 1, 1], [], []>} : vector<32x32xf32>, vector<32x4xf32>, vector<32x4xf32> -> vector<32x4xf32>
    %14 = vector.broadcast %5 : vector<32x1xf32> to vector<32x4xf32>
    %15 = arith.addf %13, %14 : vector<32x4xf32>
    %cst_16 = arith.constant 0.000000e+00 : f32
    %16 = vector.broadcast %cst_16 : f32 to vector<32x4xf32>
    %17 = arith.maximumf %15, %16 : vector<32x4xf32>
    %cst_17 = arith.constant dense<0.000000e+00> : vector<16x4xf32>
    %18 = tpu.matmul %6, %17, %cst_17 {dimension_numbers = #tpu.dot_dimension_numbers<[1], [0], [0], [1], [0, 0, 1, 1], [], []>} : vector<16x32xf32>, vector<32x4xf32>, vector<16x4xf32> -> vector<16x4xf32>
    %19 = vector.broadcast %7 : vector<16x1xf32> to vector<16x4xf32>
    %20 = arith.addf %18, %19 : vector<16x4xf32>
    %c0_18 = arith.constant 0 : index
    %c0_19 = arith.constant 0 : index
    %c0_20 = arith.constant 0 : index
    %21 = vector.load %arg8[%c0_18, %c0_19, %c0_20] : memref<1x8x2xf32, #tpu.memory_space<vmem>>, vector<1x8x2xf32>
    %22 = vector.shape_cast %21 : vector<1x8x2xf32> to vector<8x2xf32>
    %c0_21 = arith.constant 0 : index
    %c0_22 = arith.constant 0 : index
    %23 = vector.load %arg9[%c0_21, %c0_22] : memref<32x8xf32, #tpu.memory_space<vmem>>, vector<32x8xf32>
    %c0_23 = arith.constant 0 : index
    %c0_24 = arith.constant 0 : index
    %24 = vector.load %arg10[%c0_23, %c0_24] : memref<32x1xf32, #tpu.memory_space<vmem>>, vector<32x1xf32>
    %c0_25 = arith.constant 0 : index
    %c0_26 = arith.constant 0 : index
    %25 = vector.load %arg11[%c0_25, %c0_26] : memref<32x32xf32, #tpu.memory_space<vmem>>, vector<32x32xf32>
    %c0_27 = arith.constant 0 : index
    %c0_28 = arith.constant 0 : index
    %26 = vector.load %arg12[%c0_27, %c0_28] : memref<32x1xf32, #tpu.memory_space<vmem>>, vector<32x1xf32>
    %c0_29 = arith.constant 0 : index
    %c0_30 = arith.constant 0 : index
    %27 = vector.load %arg13[%c0_29, %c0_30] : memref<16x32xf32, #tpu.memory_space<vmem>>, vector<16x32xf32>
    %c0_31 = arith.constant 0 : index
    %c0_32 = arith.constant 0 : index
    %28 = vector.load %arg14[%c0_31, %c0_32] : memref<16x1xf32, #tpu.memory_space<vmem>>, vector<16x1xf32>
    %cst_33 = arith.constant dense<0.000000e+00> : vector<32x2xf32>
    %29 = tpu.matmul %23, %22, %cst_33 {dimension_numbers = #tpu.dot_dimension_numbers<[1], [0], [0], [1], [0, 0, 1, 1], [], []>} : vector<32x8xf32>, vector<8x2xf32>, vector<32x2xf32> -> vector<32x2xf32>
    %30 = vector.broadcast %24 : vector<32x1xf32> to vector<32x2xf32>
    %31 = arith.addf %29, %30 : vector<32x2xf32>
    %cst_34 = arith.constant 0.000000e+00 : f32
    %32 = vector.broadcast %cst_34 : f32 to vector<32x2xf32>
    %33 = arith.maximumf %31, %32 : vector<32x2xf32>
    %cst_35 = arith.constant dense<0.000000e+00> : vector<32x2xf32>
    %34 = tpu.matmul %25, %33, %cst_35 {dimension_numbers = #tpu.dot_dimension_numbers<[1], [0], [0], [1], [0, 0, 1, 1], [], []>} : vector<32x32xf32>, vector<32x2xf32>, vector<32x2xf32> -> vector<32x2xf32>
    %35 = vector.broadcast %26 : vector<32x1xf32> to vector<32x2xf32>
    %36 = arith.addf %34, %35 : vector<32x2xf32>
    %cst_36 = arith.constant 0.000000e+00 : f32
    %37 = vector.broadcast %cst_36 : f32 to vector<32x2xf32>
    %38 = arith.maximumf %36, %37 : vector<32x2xf32>
    %cst_37 = arith.constant dense<0.000000e+00> : vector<16x2xf32>
    %39 = tpu.matmul %27, %38, %cst_37 {dimension_numbers = #tpu.dot_dimension_numbers<[1], [0], [0], [1], [0, 0, 1, 1], [], []>} : vector<16x32xf32>, vector<32x2xf32>, vector<16x2xf32> -> vector<16x2xf32>
    %40 = vector.broadcast %28 : vector<16x1xf32> to vector<16x2xf32>
    %41 = arith.addf %39, %40 : vector<16x2xf32>
    %c0_38 = arith.constant 0 : index
    %c0_39 = arith.constant 0 : index
    %42 = vector.load %arg15[%c0_38, %c0_39] : memref<4x4xf32, #tpu.memory_space<vmem>>, vector<4x4xf32>
    %cst_40 = arith.constant dense<0.000000e+00> : vector<16x4xf32>
    %43 = tpu.matmul %20, %42, %cst_40 {dimension_numbers = #tpu.dot_dimension_numbers<[1], [0], [0], [1], [0, 0, 1, 1], [], []>} : vector<16x4xf32>, vector<4x4xf32>, vector<16x4xf32> -> vector<16x4xf32>
    %c0_41 = arith.constant 0 : index
    %c0_42 = arith.constant 0 : index
    %44 = vector.load %arg16[%c0_41, %c0_42] : memref<2x4xf32, #tpu.memory_space<vmem>>, vector<2x4xf32>
    %cst_43 = arith.constant dense<0.000000e+00> : vector<16x4xf32>
    %45 = tpu.matmul %41, %44, %cst_43 {dimension_numbers = #tpu.dot_dimension_numbers<[1], [0], [0], [1], [0, 0, 1, 1], [], []>} : vector<16x2xf32>, vector<2x4xf32>, vector<16x4xf32> -> vector<16x4xf32>
    %46 = arith.addf %43, %45 : vector<16x4xf32>
    %c0_44 = arith.constant 0 : index
    %c0_45 = arith.constant 0 : index
    %47 = vector.load %arg17[%c0_44, %c0_45] : memref<1x4xf32, #tpu.memory_space<vmem>>, vector<1x4xf32>
    %48 = vector.broadcast %47 : vector<1x4xf32> to vector<16x4xf32>
    %49 = arith.addf %46, %48 : vector<16x4xf32>
    %c0_46 = arith.constant 0 : index
    %c0_47 = arith.constant 0 : index
    %c0_48 = arith.constant 0 : index
    %50 = vector.load %arg18[%c0_46, %c0_47, %c0_48] : memref<1x16x4xf32, #tpu.memory_space<vmem>>, vector<1x16x4xf32>
    %51 = vector.shape_cast %50 : vector<1x16x4xf32> to vector<16x4xf32>
    %52 = vector.shape_cast %49 : vector<16x4xf32> to vector<1x16x4xf32>
    tpu.vector_store %arg18[%c0_46, %c0_47, %c0_48], %52 {strides = array<i32>} : memref<1x16x4xf32, #tpu.memory_space<vmem>>, vector<1x16x4xf32>,
    return
  }
  func.func @transform_0(%arg0: i32) -> (i32, i32, i32) {
    %c0_i32 = arith.constant 0 : i32
    %c0_i32_0 = arith.constant 0 : i32
    %c0_i32_1 = arith.constant 0 : i32
    return %arg0, %c0_i32, %c0_i32_0 : i32, i32, i32
  }
  func.func @transform_1(%arg0: i32) -> (i32, i32) {
    %c0_i32 = arith.constant 0 : i32
    %c0_i32_0 = arith.constant 0 : i32
    %c0_i32_1 = arith.constant 0 : i32
    return %c0_i32, %c0_i32_0 : i32, i32
  }
  func.func @transform_2(%arg0: i32) -> (i32, i32) {
    %c0_i32 = arith.constant 0 : i32
    %c0_i32_0 = arith.constant 0 : i32
    %c0_i32_1 = arith.constant 0 : i32
    return %c0_i32, %c0_i32_0 : i32, i32
  }
  func.func @transform_3(%arg0: i32) -> (i32, i32) {
    %c0_i32 = arith.constant 0 : i32
    %c0_i32_0 = arith.constant 0 : i32
    %c0_i32_1 = arith.constant 0 : i32
    return %c0_i32, %c0_i32_0 : i32, i32
  }
  func.func @transform_4(%arg0: i32) -> (i32, i32) {
    %c0_i32 = arith.constant 0 : i32
    %c0_i32_0 = arith.constant 0 : i32
    %c0_i32_1 = arith.constant 0 : i32
    return %c0_i32, %c0_i32_0 : i32, i32
  }
  func.func @transform_5(%arg0: i32) -> (i32, i32) {
    %c0_i32 = arith.constant 0 : i32
    %c0_i32_0 = arith.constant 0 : i32
    %c0_i32_1 = arith.constant 0 : i32
    return %c0_i32, %c0_i32_0 : i32, i32
  }
  func.func @transform_6(%arg0: i32) -> (i32, i32) {
    %c0_i32 = arith.constant 0 : i32
    %c0_i32_0 = arith.constant 0 : i32
    %c0_i32_1 = arith.constant 0 : i32
    return %c0_i32, %c0_i32_0 : i32, i32
  }
  func.func @transform_7(%arg0: i32) -> (i32, i32, i32) {
    %c0_i32 = arith.constant 0 : i32
    %c0_i32_0 = arith.constant 0 : i32
    %c0_i32_1 = arith.constant 0 : i32
    return %arg0, %c0_i32, %c0_i32_0 : i32, i32, i32
  }
  func.func @transform_8(%arg0: i32) -> (i32, i32) {
    %c0_i32 = arith.constant 0 : i32
    %c0_i32_0 = arith.constant 0 : i32
    %c0_i32_1 = arith.constant 0 : i32
    return %c0_i32, %c0_i32_0 : i32, i32
  }
  func.func @transform_9(%arg0: i32) -> (i32, i32) {
    %c0_i32 = arith.constant 0 : i32
    %c0_i32_0 = arith.constant 0 : i32
    %c0_i32_1 = arith.constant 0 : i32
    return %c0_i32, %c0_i32_0 : i32, i32
  }
  func.func @transform_10(%arg0: i32) -> (i32, i32) {
    %c0_i32 = arith.constant 0 : i32
    %c0_i32_0 = arith.constant 0 : i32
    %c0_i32_1 = arith.constant 0 : i32
    return %c0_i32, %c0_i32_0 : i32, i32
  }
  func.func @transform_11(%arg0: i32) -> (i32, i32) {
    %c0_i32 = arith.constant 0 : i32
    %c0_i32_0 = arith.constant 0 : i32
    %c0_i32_1 = arith.constant 0 : i32
    return %c0_i32, %c0_i32_0 : i32, i32
  }
  func.func @transform_12(%arg0: i32) -> (i32, i32) {
    %c0_i32 = arith.constant 0 : i32
    %c0_i32_0 = arith.constant 0 : i32
    %c0_i32_1 = arith.constant 0 : i32
    return %c0_i32, %c0_i32_0 : i32, i32
  }
  func.func @transform_13(%arg0: i32) -> (i32, i32) {
    %c0_i32 = arith.constant 0 : i32
    %c0_i32_0 = arith.constant 0 : i32
    %c0_i32_1 = arith.constant 0 : i32
    return %c0_i32, %c0_i32_0 : i32, i32
  }
  func.func @transform_14(%arg0: i32) -> (i32, i32) {
    %c0_i32 = arith.constant 0 : i32
    %c0_i32_0 = arith.constant 0 : i32
    %c0_i32_1 = arith.constant 0 : i32
    return %c0_i32, %c0_i32_0 : i32, i32
  }
  func.func @transform_15(%arg0: i32) -> (i32, i32) {
    %c0_i32 = arith.constant 0 : i32
    %c0_i32_0 = arith.constant 0 : i32
    %c0_i32_1 = arith.constant 0 : i32
    return %c0_i32, %c0_i32_0 : i32, i32
  }
  func.func @transform_16(%arg0: i32) -> (i32, i32) {
    %c0_i32 = arith.constant 0 : i32
    %c0_i32_0 = arith.constant 0 : i32
    %c0_i32_1 = arith.constant 0 : i32
    return %c0_i32, %c0_i32_0 : i32, i32
  }
  func.func @transform_17(%arg0: i32) -> (i32, i32, i32) {
    %c0_i32 = arith.constant 0 : i32
    %c0_i32_0 = arith.constant 0 : i32
    %c0_i32_1 = arith.constant 0 : i32
    return %arg0, %c0_i32, %c0_i32_0 : i32, i32, i32
  }
}

</mosaic_0001>

<bundles_post_ra>
// kernel: tpu_custom_call.1
= control target key start
LH: loop header
LB: loop body
LE: loop exit
PB: predicated region body
PF: predicated region fallthrough
CT: control target
= control target key end

     0   :  { %s1828_s24 = smov 0   ;;  %s2009_s0 = inlined_call_operand.vmem [shape: f32[2,8,4], index: 0, kind: input, shape index: {}]   ;;  %s2010_s1 = inlined_call_operand.vmem [shape: f32[32,8], index: 1, kind: input, shape index: {}]   ;;  %s2011_s2 = inlined_call_operand.vmem [shape: f32[32,1], index: 2, kind: input, shape index: {}]   ;;  %s2012_s3 = inlined_call_operand.vmem [shape: f32[32,32], index: 3, kind: input, shape index: {}]   ;;  %s2013_s4 = inlined_call_operand.vmem [shape: f32[32,1], index: 4, kind: input, shape index: {}]   ;;  %s2014_s5 = inlined_call_operand.vmem [shape: f32[16,32], index: 5, kind: input, shape index: {}]   ;;  %s2015_s6 = inlined_call_operand.vmem [shape: f32[16,1], index: 6, kind: input, shape index: {}]   ;;  %s2016_s7 = inlined_call_operand.vmem [shape: f32[2,8,2], index: 7, kind: input, shape index: {}]   ;;  %s2017_s8 = inlined_call_operand.vmem [shape: f32[32,8], index: 8, kind: input, shape index: {}]   ;;  %s2018_s9 = inlined_call_operand.vmem [shape: f32[32,1], index: 9, kind: input, shape index: {}]   ;;  %s2019_s10 = inlined_call_operand.vmem [shape: f32[32,32], index: 10, kind: input, shape index: {}]   ;;  %s2020_s11 = inlined_call_operand.vmem [shape: f32[32,1], index: 11, kind: input, shape index: {}]   ;;  %s2021_s12 = inlined_call_operand.vmem [shape: f32[16,32], index: 12, kind: input, shape index: {}]   ;;  %s2022_s13 = inlined_call_operand.vmem [shape: f32[16,1], index: 13, kind: input, shape index: {}]   ;;  %s2023_s14 = inlined_call_operand.vmem [shape: f32[4,4], index: 14, kind: input, shape index: {}]   ;;  %s2024_s15 = inlined_call_operand.vmem [shape: f32[2,4], index: 15, kind: input, shape index: {}]   ;;  %s2025_s16 = inlined_call_operand.vmem [shape: f32[1,4], index: 16, kind: input, shape index: {}]   ;;  %s2026_s17 = inlined_call_operand.vmem [shape: f32[2,16,4], index: 17, kind: output, shape index: {}]  }
   0x1   :  { %2028 = sst [smem:[#allocation2_spill]] %s2009_s0 }
   0x2   :  { %2029 = sst [smem:[#allocation3_spill]] %s2010_s1 }
   0x3 LB: > { %s1525_s25 = sadd.s32 4294967295, %s1735_s24   ;;  %p1529_p0 = scmp.ge.s32.totalorder %s1735_s24, 1  ;;  %s1735_s24 = sphi %s1828_s24, %s27_s24  }
   0x4   : > { %p495_p1 = scmp.lt.s32.totalorder %s1735_s24, 3 }
   0x6   : > { %p496_p2 = pnand %p1529_p0, %p495_p1 }
   0x7   : > { %p550_p3 = scmp.lt.s32.totalorder (!%p496_p2), %s1525_s25, 1  ;;  %s2030_s28 = sld [smem:[#allocation3_spill]] (!%p496_p2)  ;;  %vm604_vm0 = vcmask (!%p496_p2), 64512   ;;  %v1737_v1 = vmov (!%p496_p2), 0   ;;  %v568_v2 = vld [vmem:[%s2011_s2] sm:$0xff] (!%p496_p2)  ;;  %v570_v3 = vld [vmem:[%s2011_s2 + $0x10] sm:$0xff] (!%p496_p2) }
   0x8   : > { %499 = sbr.rel (%p496_p2) target bundleno = 1367 (0x557), region = 88  ;;  %1727 = vset.pattern.permute.xlu0 (!%p496_p2), %v1737_v1  ;;  %1728 = vset.pattern.permute.xlu1 (!%p496_p2), %v1737_v1  ;;  %v569_v4 = vld [vmem:[%s2011_s2 + $0x8] sm:$0xff] (!%p496_p2)  ;;  %v571_v5 = vld [vmem:[%s2011_s2 + $0x18] sm:$0xff] (!%p496_p2)  ;;  %s2031_s27 = sld [smem:[#allocation2_spill]] (!%p496_p2)  ;;  %v576_v9 = vld [vmem:[%s2013_s4] sm:$0xff] (!%p496_p2)  ;;  %vm726_vm1 = vcmask (!%p496_p2), 261120  }
   0x9   : > { %586 = vperm.xlu0 (!%p496_p2), %1727, %v568_v2   ;;  %596 = vperm.xlu1 (!%p496_p2), %1728, %v570_v3   ;;  %v577_v10 = vld [vmem:[%s2013_s4 + $0x8] sm:$0xff] (!%p496_p2)  ;;  %v578_v12 = vld [vmem:[%s2013_s4 + $0x10] sm:$0xff] (!%p496_p2)  ;;  %v579_v13 = vld [vmem:[%s2013_s4 + $0x18] sm:$0xff] (!%p496_p2)  ;;  %vm1368_vm2 = vcmask (!%p496_p2), 1043456   ;;  %vm1361_vm3 = vcmask (!%p496_p2), 31744   ;;  %vm1282_vm4 = vcmask (!%p496_p2), 1041408  }
   0xa   : > { %v924_v14 = vld [vmem:[%s2018_s9] sm:$0xff] (!%p496_p2)  ;;  %v925_v15 = vld [vmem:[%s2018_s9 + $0x8] sm:$0xff] (!%p496_p2)  ;;  %v926_v16 = vld [vmem:[%s2018_s9 + $0x10] sm:$0xff] (!%p496_p2)  ;;  %vm1275_vm5 = vcmask (!%p496_p2), 15360  }
   0xb   : > { %v927_v17 = vld [vmem:[%s2018_s9 + $0x18] sm:$0xff] (!%p496_p2)  ;;  %v932_v18 = vld [vmem:[%s2020_s11] sm:$0xff] (!%p496_p2)  ;;  %v933_v19 = vld [vmem:[%s2020_s11 + $0x8] sm:$0xff] (!%p496_p2) }
   0xc   : > { %v934_v20 = vld [vmem:[%s2020_s11 + $0x10] sm:$0xff] (!%p496_p2)  ;;  %v935_v21 = vld [vmem:[%s2020_s11 + $0x18] sm:$0xff] (!%p496_p2)  ;;  %v582_v22 = vld [vmem:[%s2015_s6] sm:$0xff] (!%p496_p2) }
   0xd   : > { %v564_v0 = vld [vmem:[%s2030_s28] sm:$0xff] (!%p496_p2)  ;;  %v565_v7 = vld [vmem:[%s2030_s28 + $0x8] sm:$0xff] (!%p496_p2)  ;;  %591 = vperm.xlu0 (!%p496_p2), %1727, %v569_v4   ;;  %v566_v8 = vld [vmem:[%s2030_s28 + $0x10] sm:$0xff] (!%p496_p2)  ;;  %601 = vperm.xlu1 (!%p496_p2), %1728, %v571_v5  }
   0xe   : > { %1610 = vmatprep.mubr.msk.f32.mxu0 (!%p496_p2), %vm604_vm0, %v564_v0  ;;  %v567_v11 = vld [vmem:[%s2030_s28 + $0x18] sm:$0xff] (!%p496_p2)  ;;  %v938_v23 = vld [vmem:[%s2022_s13] sm:$0xff] (!%p496_p2)  ;;  %v583_v24 = vld [vmem:[%s2015_s6 + $0x8] sm:$0xff] (!%p496_p2) }
   0xf   : > { %s2033_s25 = smov (!%p550_p3, %s1525_s25), 1  ;;  %v939_v25 = vld [vmem:[%s2022_s13 + $0x8] sm:$0xff]  ;;  %v572_v26 = vld [vmem:[%s2012_s3] sm:$0xff]  ;;  %v574_v46 = vld [vmem:[%s2012_s3 + $0x10] sm:$0xff] }
  0x10   : > { %s1530_s20 = sshll.u32 %s2033_s25, 3  ;;  %1624 = vmatprep.mubr.msk.f32.mxu1 %vm726_vm1, %v572_v26  ;;  %v573_v45 = vld [vmem:[%s2012_s3 + $0x8] sm:$0xff]  ;;  %v575_v47 = vld [vmem:[%s2012_s3 + $0x18] sm:$0xff]  ;;  %v580_v48 = vld [vmem:[%s2014_s5] sm:$0xff] }
  0x11   : > { %s553_s29 = scalar_lea.vmem %s2031_s27, %s1530_s20  ;;  %708 = vperm.xlu0 %1727, %v576_v9   ;;  %713 = vperm.xlu1 %1728, %v577_v10   ;;  %s557_s22 = scalar_lea.vmem %s2016_s7, %s1530_s20  ;;  %v581_v4 = vld [vmem:[%s2014_s5 + $0x8] sm:$0xff]  ;;  %v920_v5 = vld [vmem:[%s2017_s8] sm:$0xff] }
  0x12   : > { %v563_v6 = vld [vmem:[%s553_s29] sm:$0xff]  ;;  %s1563_s27 = sshll.u32 %s2033_s25, 4 }
  0x13   : > { %1608 = vmatprep.subr.mxu0 %v563_v6  ;;  %v919_v3 = vld [vmem:[%s557_s22] sm:$0xff]  ;;  %s562_s18 = scalar_lea.vmem %s2026_s17, %s1563_s27 }
  0x14   : > { %1609 = vmatpush3.msra.mxu0 %v563_v6  ;;  %v921_v6 = vld [vmem:[%s2017_s8 + $0x8] sm:$0xff]  ;;  %v928_v9 = vld [vmem:[%s2019_s10] sm:$0xff] }
  0x15   : > { %1611 = vmatmul.mubr.msk.f32.vlgmr.msra.gmra.mrb[0].mxu0 %vm604_vm0, %v565_v7  ;;  %718 = vperm.xlu0 %1727, %v578_v12   ;;  %v922_v7 = vld [vmem:[%s2017_s8 + $0x10] sm:$0xff] }
  0x16   : > { %1613 = vmatprep.mubr.msk.f32.mxu0 %vm604_vm0, %v566_v8  ;;  %723 = vperm.xlu1 %1728, %v579_v13   ;;  %v923_v8 = vld [vmem:[%s2017_s8 + $0x18] sm:$0xff] }
  0x19   : > { %1614 = vmatmul.mubr.msk.f32.gmra.mrb[2].mxu0 %vm604_vm0, %v567_v11  ;;  %942 = vperm.xlu0 %1727, %v924_v14  }
  0x1a   : > { %947 = vperm.xlu1 %1728, %v925_v15   ;;  %1638 = vmatprep.mubr.msk.f32.mxu0 %vm726_vm1, %v580_v48 }
  0x1d   : > { %952 = vperm.xlu0 %1727, %v926_v16  }
  0x1e   : > { %957 = vperm.xlu1 %1728, %v927_v17  }
  0x21   : > { %1063 = vperm.xlu0 %1727, %v932_v18  }
  0x22   : > { %1068 = vperm.xlu1 %1728, %v933_v19  }
  0x25   : > { %1073 = vperm.xlu0 %1727, %v934_v20  }
  0x26   : > { %1078 = vperm.xlu1 %1728, %v935_v21  }
  0x29   : > { %830 = vperm.xlu0 %1727, %v582_v22  }
  0x2a   : > { %1184 = vperm.xlu1 %1728, %v938_v23  }
  0x2d   : > { %835 = vperm.xlu0 %1727, %v583_v24  }
  0x2e   : > { %1189 = vperm.xlu1 %1728, %v939_v25  }
  0x88   : > { %v587_v27 = vpop.permute.xlu0 %586  ;;  %v597_v28 = vpop.permute.xlu1 %596 }
  0x8c   : > { %v592_v29 = vpop.permute.xlu0 %591  ;;  %v602_v35 = vpop.permute.xlu1 %601 }
  0x90   : > { %v714_v49 = vpop.permute.xlu1 %713  ;;  %v709_v50 = vpop.permute.xlu0 %708 }
  0x94   : > { %v719_v59 = vpop.permute.xlu0 %718 }
  0x95   : > { %v724_v56 = vpop.permute.xlu1 %723 }
  0x98   : > { %v943_v10 = vpop.permute.xlu0 %942 }
  0x99   : > { %v948_v14 = vpop.permute.xlu1 %947 }
  0x9c   : > { %v953_v12 = vpop.permute.xlu0 %952 }
  0x9d   : > { %v958_v21 = vpop.permute.xlu1 %957 }
  0xa0   : > { %v1064_v19 = vpop.permute.xlu0 %1063 }
  0xe8   : > { %v1612_v30 = vpop.f32.mrb[0].mxu0 }
  0xe9   : > { %v689_v31 = vadd.f32 %v1612_v30, %v592_v29  ;;  %v683_v32 = vpop.f32.mrb[1].mxu0  ;;  %v1074_v30 = vpop.permute.xlu0 %1073 }
  0xea   : > { %v684_v33 = vadd.f32 %v683_v32, %v587_v27  ;;  %v1273_v32 = vld [vmem:[%s2023_s14] sm:$0xf] }
  0xeb   : > { %v703_v34 = vmax.f32 %v689_v31, 0.0 }
  0xec   : > { %v702_v36 = vmax.f32 %v684_v33, 0.0  ;;  %v1615_v37 = vpop.f32.mrb[2].mxu0  ;;  %v929_v33 = vld [vmem:[%s2019_s10 + $0x8] sm:$0xff] }
  0xed   : > { %v699_v38 = vadd.f32 %v1615_v37, %v602_v35  ;;  %v693_v39 = vpop.f32.mrb[3].mxu0  ;;  %v831_v35 = vpop.permute.xlu0 %830 }
  0xee   : > { %v694_v40 = vadd.f32 %v693_v39, %v597_v28  ;;  %v1684_v41 = vpack.c.bf16 %v703_v34, %v702_v36  ;;  %v930_v34 = vld [vmem:[%s2019_s10 + $0x10] sm:$0xff]  ;;  %v931_v36 = vld [vmem:[%s2019_s10 + $0x18] sm:$0xff] }
  0xef   : > { %v705_v42 = vmax.f32 %v699_v38, 0.0 }
  0xf0   : > { %v704_v43 = vmax.f32 %v694_v40, 0.0  ;;  %1685 = vmatprep.subr.bf16.mxu1 %v1684_v41  ;;  %v936_v40 = vld [vmem:[%s2021_s12] sm:$0xff] }
  0xf1   : > { %1687 = vmatpush3.bf16.msra.mxu1 %v1684_v41  ;;  %v836_v38 = vpop.permute.xlu0 %835  ;;  %v1069_v41 = vpop.permute.xlu1 %1068 }
  0xf2   : > { %v1688_v44 = vpack.c.bf16 %v705_v42, %v704_v43 }
  0xf4   : > { %1689 = vmatprep.subr.bf16.mxu1 %v1688_v44 }
  0xf5   : > { %1691 = vmatpush3.bf16.msra.mxu1 %v1688_v44 }
  0xf8   : > { %1625 = vmatmul.mubr.msk.f32.vlgmr.msra.gmra.mrb[0].mxu1 %vm726_vm1, %v573_v45 }
  0xf9   : > { %1627 = vmatprep.mubr.msk.f32.mxu1 %vm726_vm1, %v574_v46 }
  0xfc   : > { %1628 = vmatmul.mubr.msk.f32.gmra.mrb[2].mxu1 %vm726_vm1, %v575_v47  ;;  %v1079_v47 = vpop.permute.xlu1 %1078 }
  0xfd   : > { %1657 = vmatprep.mubr.msk.f32.mxu1 %vm726_vm1, %v928_v9 }
 0x1cb   : > { %v1626_v51 = vpop.f32.mrb[0].mxu1 }
 0x1cc   : > { %v811_v52 = vadd.f32 %v1626_v51, %v714_v49  ;;  %v805_v53 = vpop.f32.mrb[1].mxu1 }
 0x1cd   : > { %v806_v54 = vadd.f32 %v805_v53, %v709_v50 }
 0x1ce   : > { %v825_v55 = vmax.f32 %v811_v52, 0.0 }
 0x1cf   : > { %v824_v57 = vmax.f32 %v806_v54, 0.0  ;;  %v1629_v58 = vpop.f32.mrb[2].mxu1 }
 0x1d0   : > { %v821_v60 = vadd.f32 %v1629_v58, %v724_v56  ;;  %v815_v61 = vpop.f32.mrb[3].mxu1 }
 0x1d1   : > { %v1692_v62 = vpack.c.bf16 %v825_v55, %v824_v57  ;;  %v816_v63 = vadd.f32 %v815_v61, %v719_v59  ;;  %v937_v59 = vld [vmem:[%s2021_s12 + $0x8] sm:$0xff]  ;;  %v1185_v61 = vpop.permute.xlu1 %1184 }
 0x1d2   : > { %v827_v0 = vmax.f32 %v821_v60, 0.0  ;;  %v1274_v60 = vld [vmem:[%s2024_s15] sm:$0x3] }
 0x1d3   : > { %v826_v1 = vmax.f32 %v816_v63, 0.0  ;;  %1693 = vmatprep.subr.bf16.mxu0 %v1692_v62 }
 0x1d4   : > { %1695 = vmatpush3.bf16.msra.mxu0 %v1692_v62 }
 0x1d5   : > { %v1696_v2 = vpack.c.bf16 %v827_v0, %v826_v1  ;;  %v1190_v0 = vpop.permute.xlu1 %1189 }
 0x1d7   : > { %1697 = vmatprep.subr.bf16.mxu0 %v1696_v2 }
 0x1d8   : > { %1699 = vmatpush3.bf16.msra.mxu0 %v1696_v2 }
 0x1d9   : > { %1641 = vmatprep.subr.mxu0 %v919_v3 }
 0x1db   : > { %1639 = vmatmul.mubr.msk.f32.vlgmr.msra.gmra.mrb[4].mxu0 %vm726_vm1, %v581_v4  ;;  %v1560_v4 = vld [vmem:[%s2025_s16] ss:$0 sm:$0xff] }
 0x1dc   : > { %1642 = vmatpush3.msra.mxu0 %v919_v3  ;;  %1643 = vmatprep.mubr.msk.f32.mxu0 %vm604_vm0, %v920_v5 }
 0x1df   : > { %1644 = vmatmul.mubr.msk.f32.vlgmr.msra.gmra.mrb[6].mxu0 %vm604_vm0, %v921_v6 }
 0x1e0   : > { %1646 = vmatprep.mubr.msk.f32.mxu0 %vm604_vm0, %v922_v7 }
 0x1e3   : > { %1647 = vmatmul.mubr.msk.f32.gmra.mrb[8].mxu0 %vm604_vm0, %v923_v8 }
 0x1e4   : > { %1671 = vmatprep.mubr.msk.f32.mxu0 %vm726_vm1, %v936_v40 }
 0x2ae   : > { %v1640_v11 = vpop.f32.mrb[4].mxu0 }
 0x2af   : > { %v910_v13 = vpop.f32.mrb[5].mxu0  ;;  %v916_v39 = vadd.f32 %v1640_v11, %v836_v38 }
 0x2b0   : > { %v911_v37 = vadd.f32 %v910_v13, %v831_v35 }
 0x2b2   : > { %v1645_v15 = vpop.f32.mrb[6].mxu0 }
 0x2b3   : > { %v1044_v16 = vadd.f32 %v1645_v15, %v948_v14  ;;  %v1038_v17 = vpop.f32.mrb[7].mxu0 }
 0x2b4   : > { %v1039_v18 = vadd.f32 %v1038_v17, %v943_v10 }
 0x2b5   : > { %v1058_v20 = vmax.f32 %v1044_v16, 0.0 }
 0x2b6   : > { %v1057_v22 = vmax.f32 %v1039_v18, 0.0  ;;  %v1648_v23 = vpop.f32.mrb[8].mxu0 }
 0x2b7   : > { %v1054_v24 = vadd.f32 %v1648_v23, %v958_v21  ;;  %v1048_v25 = vpop.f32.mrb[9].mxu0 }
 0x2b8   : > { %v1700_v26 = vpack.c.bf16 %v1058_v20, %v1057_v22  ;;  %v1049_v27 = vadd.f32 %v1048_v25, %v953_v12 }
 0x2b9   : > { %v1060_v28 = vmax.f32 %v1054_v24, 0.0 }
 0x2ba   : > { %v1059_v29 = vmax.f32 %v1049_v27, 0.0  ;;  %1701 = vmatprep.subr.bf16.mxu1 %v1700_v26 }
 0x2bb   : > { %1703 = vmatpush3.bf16.msra.mxu1 %v1700_v26 }
 0x2bc   : > { %v1704_v31 = vpack.c.bf16 %v1060_v28, %v1059_v29 }
 0x2be   : > { %1705 = vmatprep.subr.bf16.mxu1 %v1704_v31 }
 0x2bf   : > { %1707 = vmatpush3.bf16.msra.mxu1 %v1704_v31 }
 0x2c0   : > { %1679 = vmatprep.subr.msk.mxu1 %vm1368_vm2, %v1273_v32 }
 0x2c2   : > { %1658 = vmatmul.mubr.msk.f32.vlgmr.msra.gmra.mrb[4].mxu1 %vm726_vm1, %v929_v33 }
 0x2c3   : > { %1660 = vmatprep.mubr.msk.f32.mxu1 %vm726_vm1, %v930_v34  ;;  %1680 = vmatpush3.msk.msra.mxu1 %vm1368_vm2, %v1273_v32 }
 0x2c6   : > { %1661 = vmatmul.mubr.msk.f32.gmra.mrb[6].mxu1 %vm726_vm1, %v931_v36 }
 0x2c7   : > { %1681 = vmatprep.mubr.msk.f32.mxu1 %vm1361_vm3, %v911_v37 }
 0x2ca   : > { %1682 = vmatmul.mubr.msk.f32.vlgmr.msra.gmra.mrb[8].mxu1 %vm1361_vm3, %v916_v39 }
 0x395   : > { %v1659_v42 = vpop.f32.mrb[4].mxu1 }
 0x396   : > { %v1165_v43 = vadd.f32 %v1659_v42, %v1069_v41  ;;  %v1159_v44 = vpop.f32.mrb[5].mxu1 }
 0x397   : > { %v1160_v45 = vadd.f32 %v1159_v44, %v1064_v19 }
 0x398   : > { %v1179_v46 = vmax.f32 %v1165_v43, 0.0 }
 0x399   : > { %v1178_v48 = vmax.f32 %v1160_v45, 0.0  ;;  %v1662_v49 = vpop.f32.mrb[6].mxu1 }
 0x39a   : > { %v1175_v50 = vadd.f32 %v1662_v49, %v1079_v47  ;;  %v1169_v51 = vpop.f32.mrb[7].mxu1 }
 0x39b   : > { %v1708_v52 = vpack.c.bf16 %v1179_v46, %v1178_v48  ;;  %v1170_v53 = vadd.f32 %v1169_v51, %v1074_v30 }
 0x39c   : > { %v1181_v54 = vmax.f32 %v1175_v50, 0.0 }
 0x39d   : > { %v1180_v55 = vmax.f32 %v1170_v53, 0.0  ;;  %1709 = vmatprep.subr.bf16.mxu0 %v1708_v52  ;;  %v1683_v56 = vpop.f32.mrb[8].mxu1 }
 0x39e   : > { %1711 = vmatpush3.bf16.msra.mxu0 %v1708_v52  ;;  %v1438_v57 = vpop.f32.mrb[9].mxu1 }
 0x39f   : > { %v1712_v58 = vpack.c.bf16 %v1181_v54, %v1180_v55 }
 0x3a1   : > { %1713 = vmatprep.subr.bf16.mxu0 %v1712_v58 }
 0x3a2   : > { %1715 = vmatpush3.bf16.msra.mxu0 %v1712_v58 }
 0x3a3   : > { %1674 = vmatprep.subr.msk.mxu0 %vm1282_vm4, %v1274_v60 }
 0x3a5   : > { %1672 = vmatmul.mubr.msk.f32.vlgmr.msra.gmra.mrb[10].mxu0 %vm726_vm1, %v937_v59 }
 0x3a6   : > { %1675 = vmatpush3.msk.msra.mxu0 %vm1282_vm4, %v1274_v60 }
 0x478   : > { %v1673_v62 = vpop.f32.mrb[10].mxu0 }
 0x479   : > { %v1264_v63 = vpop.f32.mrb[11].mxu0  ;;  %v1270_v2 = vadd.f32 %v1673_v62, %v1190_v0 }
 0x47a   : > { %v1265_v1 = vadd.f32 %v1264_v63, %v1185_v61 }
 0x47c   : > { %1676 = vmatprep.mubr.msk.f32.mxu0 %vm1275_vm5, %v1265_v1 }
 0x47d   : > { %1677 = vmatmul.mubr.msk.f32.vlgmr.msra.gmra.mrb[12].mxu0 %vm1275_vm5, %v1270_v2 }
 0x550   : > { %v1678_v3 = vpop.f32.mrb[12].mxu0 }
 0x551   : > { %v1444_v5 = vadd.f32 %v1683_v56, %v1678_v3  ;;  %v1352_v6 = vpop.f32.mrb[13].mxu0 }
 0x552   : > { %v1439_v7 = vadd.f32 %v1438_v57, %v1352_v6 }
 0x553   : > { %v1455_v8 = vadd.f32 %v1560_v4, %v1444_v5 }
 0x554   : > { %v1454_v9 = vadd.f32 %v1560_v4, %v1439_v7 }
 0x555   : > { %1457 = vst.msk [vmem:[%s562_s18 + $0x8] sm:$0xff] %vm1361_vm3, %v1455_v8 }
 0x556   : > { %1456 = vst.msk [vmem:[%s562_s18] sm:$0xff] %vm1361_vm3, %v1454_v9 }
 0x557 PF: > { %s27_s24 = sadd.s32 1, %s1735_s24  }
 0x558   : > { %p24_p4 = scmp.ge.s32.totalorder %s27_s24, 4  }
 0x55a   :  { %26 = sbr.rel (!%p24_p4) target bundleno = 3 (0x3), region = 121 }

</bundles_post_ra>
